<compile_context>
chip_gen: v7x
topology: tpu7x:2x2x1
jax: 0.10.0
libtpu: 0.0.40
codegen_flags: <defaults>
</compile_context>

<pallas_src>
from functools import partial

import jax
import jax.numpy as jnp
from jax.experimental import pallas as pl
from jax.experimental.pallas import tpu as pltpu


# -----------------------------------------------------------------------------
# Kernel
#   nodes_ref : [TM, 1]   int32   node ids for this tile
#   uv_ref    : [TM, K]   int32   fixed-length neighbor lists for this tile
#   g_ref     : [2E, D]   bf16    stacked precomputed tables (resident):
#                                   rows [0,  E) : features @ W_self^T
#                                   rows [E, 2E) : (features @ W_neigh^T) / K
#   b_ref     : [1, D]    f32     bias (resident)
#   out_ref   : [TM, D]           relu( Linear(concat(self, neigh)) )
# -----------------------------------------------------------------------------
def _encoder_kernel(nodes_ref, uv_ref, g_ref, b_ref, out_ref):
    tile_m = out_ref.shape[0]
    num_entities = g_ref.shape[0] // 2
    num_neigh = uv_ref.shape[1]

    ent_ids = jax.lax.broadcasted_iota(jnp.int32, (tile_m, num_entities), 1)

    # --- self-feature selector: one-hot row per node, single bool->bf16 cast --
    self_sel = (nodes_ref[...] == ent_ids).astype(jnp.bfloat16)          # [TM, E]

    # --- neighbor count matrix ------------------------------------------------
    # Compare/add chain stays in f32 (v5e-friendly: no bf16 VALU there); one
    # cast at the end. counts <= K so bf16 is exact; the 1/K mean scale is
    # already folded into the G_neigh half of g_ref.
    uv = uv_ref[...]                                                     # [TM, K]
    counts = (uv[:, 0:1] == ent_ids).astype(jnp.float32)
    for kk in range(1, num_neigh):                                       # K small & static
        counts = counts + (uv[:, kk:kk + 1] == ent_ids).astype(jnp.float32)
    counts = counts.astype(jnp.bfloat16)                                 # [TM, E]

    # --- single stacked matmul: both contributions accumulate inside the MXU --
    sel = jnp.concatenate([self_sel, counts], axis=1)                    # [TM, 2E]
    y = jnp.dot(sel, g_ref[...], preferred_element_type=jnp.float32)     # [TM, D] f32
    y = y + b_ref[...]                                                   # f32 epilogue
    out_ref[...] = jnp.maximum(y, 0.0).astype(out_ref.dtype)


# -----------------------------------------------------------------------------
# One-time parameter preparation (outside the hot path).
# -----------------------------------------------------------------------------
def prepare_encoder_params(features_weight, w, b, num_neigh):
    d = b.shape[0]
    hi = jax.lax.Precision.HIGHEST
    feat = features_weight.astype(jnp.float32)
    g_self = jnp.dot(feat, w[:, :d].T.astype(jnp.float32), precision=hi)   # [E, D]
    g_neigh = jnp.dot(feat, w[:, d:].T.astype(jnp.float32), precision=hi)  # [E, D]
    g_neigh = g_neigh * (1.0 / num_neigh)            # fold mean scale in (f32)
    g_table = jnp.concatenate([g_self, g_neigh], axis=0).astype(jnp.bfloat16)
    return dict(
        g_table=g_table,                              # [2E, D] bf16
        bias=b.reshape(1, d).astype(jnp.float32),     # [1, D]  f32
    )


def pick_tile_m(n_nodes, max_tile=256):
    """Largest multiple-of-8 tile <= max_tile that still leaves >= 2 grid steps
    (keeps both v7x TensorCores busy under dimension_semantics=("parallel",))."""
    half = (n_nodes + 1) // 2
    tm = ((half + 7) // 8) * 8
    return int(max(8, min(max_tile, tm)))


# -----------------------------------------------------------------------------
# Forward: tiny int gather of per-node neighbor lists in JAX, everything else
# (gather, mean aggregation, linear, relu — all fused into one matmul) inside
# the Pallas kernel.
# -----------------------------------------------------------------------------
@partial(jax.jit, static_argnames=("tile_m", "out_dtype"))
def encoder_forward(nodes, uv_lists, params, *, tile_m=128, out_dtype=jnp.float32):
    g = params["g_table"]                                        # [2E, D] bf16
    bias = params["bias"]                                        # [1, D]  f32
    e2, d = g.shape
    n = nodes.shape[0]
    uv_nodes = uv_lists[nodes].astype(jnp.int32)                 # [N, K] cheap int gather
    k = uv_nodes.shape[1]

    # Pad the node batch to a multiple of tile_m (tile_m is a multiple of 8).
    n_pad = ((n + tile_m - 1) // tile_m) * tile_m
    pad = n_pad - n
    nodes2d = jnp.pad(nodes.astype(jnp.int32), (0, pad)).reshape(n_pad, 1)
    uv_pad = jnp.pad(uv_nodes, ((0, pad), (0, 0)))

    # VMEM budget: resident g_table (2E*D*2 B) + bias, plus double-buffered
    # id/uv/out tiles per grid step — tiny at demo sizes; the explicit limit
    # leaves headroom on v7x (64 MiB physical) and lifts v5e's 16 MiB default.
    grid = (n_pad // tile_m,)
    out = pl.pallas_call(
        _encoder_kernel,
        out_shape=jax.ShapeDtypeStruct((n_pad, d), out_dtype),
        grid_spec=pltpu.PrefetchScalarGridSpec(
            num_scalar_prefetch=0,
            grid=grid,
            in_specs=[
                pl.BlockSpec((tile_m, 1), lambda i: (i, 0)),   # node ids (tiled)
                pl.BlockSpec((tile_m, k), lambda i: (i, 0)),   # neighbor ids (tiled)
                pl.BlockSpec((e2, d), lambda i: (0, 0)),       # stacked G table (resident)
                pl.BlockSpec((1, d), lambda i: (0, 0)),        # bias (resident)
            ],
            out_specs=pl.BlockSpec((tile_m, d), lambda i: (i, 0)),
        ),
        compiler_params=pltpu.CompilerParams(
            dimension_semantics=("parallel",),                 # 2 TCs on v7x
            vmem_limit_bytes=48 * 1024 * 1024),
    )(nodes2d, uv_pad, g, bias)
    return out[:n]


# -----------------------------------------------------------------------------
# Demo + reference check
# -----------------------------------------------------------------------------
if __name__ == "__main__":
    key = jax.random.PRNGKey(0)
    k_feat, k_w, k_b, k_uv, k_nodes = jax.random.split(key, 5)

    num_entities = 128   # E (rows of the embedding table)
    embed_dim = 128      # D (lane-dense: multiple of 128)
    n_neigh = 5          # K (fixed-length neighbor lists)
    n_nodes = 96         # node batch (exercises padding + 2 grid steps)

    features_weight = jax.random.normal(
        k_feat, (num_entities, embed_dim), dtype=jnp.float32)
    # nn.Linear(2*D, D): weight [D, 2D], bias [D]
    w = jax.random.normal(k_w, (embed_dim, 2 * embed_dim), dtype=jnp.float32) * 0.1
    b = jax.random.normal(k_b, (embed_dim,), dtype=jnp.float32) * 0.1
    uv_lists = jax.random.randint(
        k_uv, (num_entities, n_neigh), 0, num_entities, dtype=jnp.int32)
    nodes = jax.random.randint(
        k_nodes, (n_nodes,), 0, num_entities, dtype=jnp.int32)

    params = prepare_encoder_params(features_weight, w, b, n_neigh)
    tile_m = pick_tile_m(n_nodes)     # 48 -> 2 grid steps for the 96-node batch
    out = encoder_forward(nodes, uv_lists, params, tile_m=tile_m)
    out = jax.block_until_ready(out)

    # Pure-JAX reference mirroring the kernel's bf16-table / f32-accumulate math.
    hi = jax.lax.Precision.HIGHEST
    g_f32 = params["g_table"].astype(jnp.float32)
    ent = jnp.arange(num_entities)
    self_sel_ref = (nodes[:, None] == ent[None, :]).astype(jnp.bfloat16)
    neigh_ids = uv_lists[nodes]                                        # [N, K]
    counts_ref = (neigh_ids[:, :, None] == ent[None, None, :]
                  ).astype(jnp.float32).sum(axis=1).astype(jnp.bfloat16)
    sel_ref = jnp.concatenate([self_sel_ref, counts_ref], axis=1).astype(jnp.float32)
    y_ref = jnp.dot(sel_ref, g_f32, precision=hi) + b
    ref = jnp.maximum(y_ref, 0.0)

    assert out.shape == (n_nodes, embed_dim)
    err = float(jnp.max(jnp.abs(out.astype(jnp.float32) - ref)))
    assert jnp.allclose(out.astype(jnp.float32), ref, atol=2e-3, rtol=2e-3), err

    print("KERNEL_OK")
</pallas_src>

<mosaic_0001>
module attributes {stable_mosaic.version = 11 : i64} {
  func.func @_encoder_kernel(%arg0: i32, %arg1: memref<48x1xi32, #tpu.memory_space<vmem>>, %arg2: memref<48x5xi32, #tpu.memory_space<vmem>>, %arg3: memref<256x128xbf16, #tpu.memory_space<vmem>>, %arg4: memref<1x128xf32, #tpu.memory_space<vmem>>, %arg5: memref<48x128xf32, #tpu.memory_space<vmem>>) attributes {dimension_semantics = [#tpu.dimension_semantics<parallel>], iteration_bounds = array<i64: 2>, scalar_prefetch = 0 : i64, scratch_operands = 0 : i64, tpu.core_type = #tpu.core_type<tc>, window_params = [{transform_indices = @transform_0, window_bounds = array<i64: 48, 1>}, {transform_indices = @transform_1, window_bounds = array<i64: 48, 5>}, {pipeline_mode = #tpu.pipeline_mode<synchronous>, transform_indices = @transform_2, window_bounds = array<i64: 256, 128>}, {pipeline_mode = #tpu.pipeline_mode<synchronous>, transform_indices = @transform_3, window_bounds = array<i64: 1, 128>}, {transform_indices = @transform_4, window_bounds = array<i64: 48, 128>}]} {
    %0 = tpu.iota {dimensions = array<i32: 1>} : vector<48x128xi32>
    %c0 = arith.constant 0 : index
    %c0_0 = arith.constant 0 : index
    %1 = vector.load %arg1[%c0, %c0_0] : memref<48x1xi32, #tpu.memory_space<vmem>>, vector<48x1xi32>
    %2 = vector.broadcast %1 : vector<48x1xi32> to vector<48x128xi32>
    %3 = arith.cmpi eq, %2, %0 : vector<48x128xi32>
    %4 = arith.extui %3 : vector<48x128xi1> to vector<48x128xi32>
    %5 = arith.sitofp %4 : vector<48x128xi32> to vector<48x128xf32>
    %6 = arith.truncf %5 : vector<48x128xf32> to vector<48x128xbf16>
    %c0_1 = arith.constant 0 : index
    %c0_2 = arith.constant 0 : index
    %7 = vector.load %arg2[%c0_1, %c0_2] : memref<48x5xi32, #tpu.memory_space<vmem>>, vector<48x5xi32>
    %8 = vector.extract_strided_slice %7 {offsets = [0, 0], sizes = [48, 1], strides = [1, 1]} : vector<48x5xi32> to vector<48x1xi32>
    %9 = vector.broadcast %8 : vector<48x1xi32> to vector<48x128xi32>
    %10 = arith.cmpi eq, %9, %0 : vector<48x128xi32>
    %11 = arith.extui %10 : vector<48x128xi1> to vector<48x128xi32>
    %12 = arith.sitofp %11 : vector<48x128xi32> to vector<48x128xf32>
    %13 = vector.extract_strided_slice %7 {offsets = [0, 1], sizes = [48, 1], strides = [1, 1]} : vector<48x5xi32> to vector<48x1xi32>
    %14 = vector.broadcast %13 : vector<48x1xi32> to vector<48x128xi32>
    %15 = arith.cmpi eq, %14, %0 : vector<48x128xi32>
    %16 = arith.extui %15 : vector<48x128xi1> to vector<48x128xi32>
    %17 = arith.sitofp %16 : vector<48x128xi32> to vector<48x128xf32>
    %18 = arith.addf %12, %17 : vector<48x128xf32>
    %19 = vector.extract_strided_slice %7 {offsets = [0, 2], sizes = [48, 1], strides = [1, 1]} : vector<48x5xi32> to vector<48x1xi32>
    %20 = vector.broadcast %19 : vector<48x1xi32> to vector<48x128xi32>
    %21 = arith.cmpi eq, %20, %0 : vector<48x128xi32>
    %22 = arith.extui %21 : vector<48x128xi1> to vector<48x128xi32>
    %23 = arith.sitofp %22 : vector<48x128xi32> to vector<48x128xf32>
    %24 = arith.addf %18, %23 : vector<48x128xf32>
    %25 = vector.extract_strided_slice %7 {offsets = [0, 3], sizes = [48, 1], strides = [1, 1]} : vector<48x5xi32> to vector<48x1xi32>
    %26 = vector.broadcast %25 : vector<48x1xi32> to vector<48x128xi32>
    %27 = arith.cmpi eq, %26, %0 : vector<48x128xi32>
    %28 = arith.extui %27 : vector<48x128xi1> to vector<48x128xi32>
    %29 = arith.sitofp %28 : vector<48x128xi32> to vector<48x128xf32>
    %30 = arith.addf %24, %29 : vector<48x128xf32>
    %31 = vector.extract_strided_slice %7 {offsets = [0, 4], sizes = [48, 1], strides = [1, 1]} : vector<48x5xi32> to vector<48x1xi32>
    %32 = vector.broadcast %31 : vector<48x1xi32> to vector<48x128xi32>
    %33 = arith.cmpi eq, %32, %0 : vector<48x128xi32>
    %34 = arith.extui %33 : vector<48x128xi1> to vector<48x128xi32>
    %35 = arith.sitofp %34 : vector<48x128xi32> to vector<48x128xf32>
    %36 = arith.addf %30, %35 : vector<48x128xf32>
    %37 = arith.truncf %36 : vector<48x128xf32> to vector<48x128xbf16>
    %38 = tpu.concatenate %6, %37 in 1 : vector<48x128xbf16>, vector<48x128xbf16> -> vector<48x256xbf16>
    %c0_3 = arith.constant 0 : index
    %c0_4 = arith.constant 0 : index
    %39 = vector.load %arg3[%c0_3, %c0_4] : memref<256x128xbf16, #tpu.memory_space<vmem>>, vector<256x128xbf16>
    %cst = arith.constant dense<0.000000e+00> : vector<48x128xf32>
    %40 = tpu.matmul %38, %39, %cst {dimension_numbers = #tpu.dot_dimension_numbers<[1], [0], [0], [1], [0, 0, 1, 1], [], []>} : vector<48x256xbf16>, vector<256x128xbf16>, vector<48x128xf32> -> vector<48x128xf32>
    %c0_5 = arith.constant 0 : index
    %c0_6 = arith.constant 0 : index
    %41 = vector.load %arg4[%c0_5, %c0_6] : memref<1x128xf32, #tpu.memory_space<vmem>>, vector<1x128xf32>
    %42 = vector.broadcast %41 : vector<1x128xf32> to vector<48x128xf32>
    %43 = arith.addf %40, %42 : vector<48x128xf32>
    %cst_7 = arith.constant 0.000000e+00 : f32
    %44 = vector.broadcast %cst_7 : f32 to vector<48x128xf32>
    %45 = arith.maximumf %43, %44 : vector<48x128xf32>
    %c0_8 = arith.constant 0 : index
    %c0_9 = arith.constant 0 : index
    %46 = vector.load %arg5[%c0_8, %c0_9] : memref<48x128xf32, #tpu.memory_space<vmem>>, vector<48x128xf32>
    tpu.vector_store %arg5[%c0_8, %c0_9], %45 {strides = array<i32>} : memref<48x128xf32, #tpu.memory_space<vmem>>, vector<48x128xf32>,
    return
  }
  func.func @transform_0(%arg0: i32) -> (i32, i32) {
    %c0_i32 = arith.constant 0 : i32
    %c0_i32_0 = arith.constant 0 : i32
    return %arg0, %c0_i32 : i32, i32
  }
  func.func @transform_1(%arg0: i32) -> (i32, i32) {
    %c0_i32 = arith.constant 0 : i32
    %c0_i32_0 = arith.constant 0 : i32
    return %arg0, %c0_i32 : i32, i32
  }
  func.func @transform_2(%arg0: i32) -> (i32, i32) {
    %c0_i32 = arith.constant 0 : i32
    %c0_i32_0 = arith.constant 0 : i32
    %c0_i32_1 = arith.constant 0 : i32
    return %c0_i32, %c0_i32_0 : i32, i32
  }
  func.func @transform_3(%arg0: i32) -> (i32, i32) {
    %c0_i32 = arith.constant 0 : i32
    %c0_i32_0 = arith.constant 0 : i32
    %c0_i32_1 = arith.constant 0 : i32
    return %c0_i32, %c0_i32_0 : i32, i32
  }
  func.func @transform_4(%arg0: i32) -> (i32, i32) {
    %c0_i32 = arith.constant 0 : i32
    %c0_i32_0 = arith.constant 0 : i32
    return %arg0, %c0_i32 : i32, i32
  }
}

</mosaic_0001>

<bundles_post_ra>
// kernel: encoder_forward.1
= control target key start
LH: loop header
LB: loop body
LE: loop exit
PB: predicated region body
PF: predicated region fallthrough
CT: control target
= control target key end

     0   :  { %9 = vsyncpa [#allocation3], 0  ;;  %s1395_s0 = inlined_call_operand.vmem [shape: s32[96,1], index: 0, kind: input, shape index: {}]   ;;  %s1396_s1 = inlined_call_operand.vmem [shape: s32[96,5], index: 1, kind: input, shape index: {}]   ;;  %s1397_s2 = inlined_call_operand.vmem [shape: bf16[256,128], index: 2, kind: input, shape index: {}]   ;;  %s1398_s3 = inlined_call_operand.vmem [shape: f32[1,128], index: 3, kind: input, shape index: {}]   ;;  %s1399_s4 = inlined_call_operand.hbm [shape: f32[96,128], index: 4, kind: output, shape index: {}]  }
   0x1   :  { %11 = vsyncpa [#allocation3 + $0x1], 0  ;;  %s1074_s15 = smov 0   ;;  %s1076_s16 = smov 0  }
   0x2   :  { %s1078_s17 = smov 0   ;;  %s1080_s18 = smov 0  }
   0x3 LB: > { %s1095_s19 = sadd.s32 4294967295, %s1037_s18   ;;  %s774_s20 = sadd.s32 4294967294, %s1037_s18   ;;  %s1037_s18 = sphi %s1080_s18, %s1405_s18   ;;  %s1033_s17 = sphi %s1078_s17, %s1404_s17   ;;  %s1029_s16 = sphi %s1076_s16, %s1403_s16   ;;  %s1025_s15 = sphi %s1074_s15, %s1402_s15  }
   0x4   : > { %s1099_s21 = sadd.s32 1, %s1037_s18   ;;  %s118_s22 = sadd.s32 1, %s1033_s17 }
   0x5   : > { %s115_s23 = ssub.s32 %s1037_s18, %s1099_s21  ;;  %p128_p0 = scmp.ne.s32.totalorder %s1033_s17, %s1029_s16 }
   0x6   : > { %p116_p1 = scmp.eq.s32.totalorder %s115_s23, 0  ;;  %p129_p2 = scmp.eq.s32.totalorder %s1095_s19, 1 }
   0x7   : > { %p134_p3 = scmp.ne.s32.totalorder %s1029_s16, %s1025_s15  ;;  %p135_p4 = scmp.eq.s32.totalorder %s774_s20, 1 }
   0x8   : > { %s1110_s24 = scalar_select %p116_p1, %s1033_s17, %s118_s22  }
   0x9   : > { %p1112_p5 = por %p129_p2, %p128_p0  ;;  %p1116_p6 = por %p135_p4, %p134_p3 }
   0xa   : > { %p777_p7 = scmp.ge.s32.totalorder %s1037_s18, 1  ;;  %p177_p8 = scmp.lt.s32.totalorder %s1037_s18, 3 }
   0xc   : > { %p178_p9 = pnand %p777_p7, %p177_p8 }
   0xd   : > { %s208_s27 = smul.u32 (!%p178_p9), 6, %s1095_s19  ;;  %v1039_v0 = vmov (!%p178_p9), 1   ;;  %v1040_v4 = vmov (!%p178_p9), 2   ;;  %v1041_v7 = vmov (!%p178_p9), 3   ;;  %v1042_v8 = vmov (!%p178_p9), 4   ;;  %v959_v11 = vld [vmem:[%s1397_s2 + $0x40] sm:$0xff] (!%p178_p9)  }
   0xe   : > { %181 = sbr.rel (%p178_p9) target bundleno = 485 (0x1e5), region = 36  ;;  %948 = vset.pattern.permute.xlu0 (!%p178_p9), %v1039_v0  ;;  %942 = vset.pattern.permute.xlu1 (!%p178_p9), %v1039_v0  ;;  %v1043_v10 = vmov (!%p178_p9), 0   ;;  %v960_v12 = vld [vmem:[%s1397_s2] sm:$0xff] (!%p178_p9)   ;;  %v961_v13 = vld [vmem:[%s1397_s2 + $0x48] sm:$0xff] (!%p178_p9)   ;;  %v963_v15 = vld [vmem:[%s1397_s2 + $0x50] sm:$0xff] (!%p178_p9)   ;;  %v222_v44 = vlaneseq (!%p178_p9)  ;;  %v1044_v51 = vmov (!%p178_p9), 0.0  }
   0xf   : > { %p209_p10 = scmp.lt.s32.totalorder (!%p178_p9), %s208_s27, 11  ;;  %877 = vmatprep.subr.bf16.mxu1 (!%p178_p9), %v959_v11  ;;  %843 = vmatprep.subr.bf16.mxu0 (!%p178_p9), %v959_v11  ;;  %v962_v14 = vld [vmem:[%s1397_s2 + $0x8] sm:$0xff] (!%p178_p9)   ;;  %v964_v16 = vld [vmem:[%s1397_s2 + $0x10] sm:$0xff] (!%p178_p9)   ;;  %v965_v17 = vld [vmem:[%s1397_s2 + $0x58] sm:$0xff] (!%p178_p9)   ;;  %s1046_s29 = smov (!%p178_p9), [#allocation2]  }
  0x10   : > { %885 = vmatpush3.bf16.msra.mxu1 (!%p178_p9), %v960_v12  ;;  %844 = vmatpush3.bf16.msra.mxu0 (!%p178_p9), %v960_v12  ;;  %v966_v18 = vld [vmem:[%s1397_s2 + $0x18] sm:$0xff] (!%p178_p9)   ;;  %v967_v19 = vld [vmem:[%s1397_s2 + $0x60] sm:$0xff] (!%p178_p9)   ;;  %v969_v22 = vld [vmem:[%s1397_s2 + $0x68] sm:$0xff] (!%p178_p9)   ;;  %v1242_v46 = vand.u32 (!%p178_p9), 127, %v222_v44  ;;  %s979_s30 = sshll.u32 (!%p178_p9), %s1046_s29, 4  ;;  %s980_s30 = int_to_ptr.vmem [resolvable:$false] %s979_s30 }
  0x11   : > { %878 = vmatprep.subr.bf16.mxu1 (!%p178_p9), %v961_v13  ;;  %845 = vmatprep.subr.bf16.mxu0 (!%p178_p9), %v961_v13  ;;  %v968_v20 = vld [vmem:[%s1397_s2 + $0x20] sm:$0xff] (!%p178_p9)   ;;  %v970_v23 = vld [vmem:[%s1397_s2 + $0x28] sm:$0xff] (!%p178_p9)   ;;  %v971_v25 = vld [vmem:[%s1397_s2 + $0x70] sm:$0xff] (!%p178_p9)  }
  0x12   : > { %v972_v26 = vld [vmem:[%s1397_s2 + $0x30] sm:$0xff] (!%p178_p9)   ;;  %v973_v28 = vld [vmem:[%s1397_s2 + $0x78] sm:$0xff] (!%p178_p9)  }
  0x13   : > { %v974_v30 = vld [vmem:[%s1397_s2 + $0x38] sm:$0xff] (!%p178_p9)  }
  0x14   : > { %886 = vmatpush3.bf16.msra.mxu1 (!%p178_p9), %v962_v14  ;;  %846 = vmatpush3.bf16.msra.mxu0 (!%p178_p9), %v962_v14 }
  0x15   : > { %s1407_s27 = smov (!%p209_p10, %s208_s27), 11  ;;  %879 = vmatprep.subr.bf16.mxu1 %v963_v15  ;;  %847 = vmatprep.subr.bf16.mxu0 %v963_v15 }
  0x16   : > { %s778_s28 = sshll.u32 %s1407_s27, 3  ;;  %s842_s27 = smul.u32 768, %s1095_s19 }
  0x17   : > { %s218_s5 = scalar_lea.vmem %s1396_s1, %s778_s28  ;;  %s1186_s9 = scalar_lea.vmem %s1395_s0, %s778_s28 }
  0x18   : > { %v271_v1 = vld [vmem:[%s218_s5 + $0x10] sm:$0xff]  ;;  %v1131_v2 = vld [vmem:[%s218_s5 + $0x8] sm:$0xff]  ;;  %v272_v3 = vld [vmem:[%s218_s5 + $0x18] sm:$0xff]  ;;  %887 = vmatpush3.bf16.msra.mxu1 %v964_v16  ;;  %848 = vmatpush3.bf16.msra.mxu0 %v964_v16  ;;  %s1346_s22 = scalar_lea.hbm %s1399_s4, %s842_s27 }
  0x19   : > { %318 = vperm.xlu1 %942, %v271_v1   ;;  %315 = vperm.xlu0 %948, %v1131_v2   ;;  %v1135_v5 = vld [vmem:[%s218_s5] sm:$0xff]  ;;  %v1139_v6 = vld [vmem:[%s218_s5 + $0x28] sm:$0xff]  ;;  %v227_v21 = vld [vmem:[%s1186_s9 + $0x18] sm:$0xff] }
  0x1a   : > { %v1145_v9 = vld [vmem:[%s218_s5 + $0x20] sm:$0xff]  ;;  %880 = vmatprep.subr.bf16.mxu1 %v965_v17  ;;  %849 = vmatprep.subr.bf16.mxu0 %v965_v17  ;;  %v229_v27 = vld [vmem:[%s1186_s9 + $0x28] sm:$0xff]  ;;  %v226_v29 = vld [vmem:[%s1186_s9 + $0x10] sm:$0xff]  ;;  %v1045_v17 = vmov 1.0|1.0   ;;  %s981_s5 = scalar_lea.vmem %s980_s30, 1536 }
  0x1b   : > { %v224_v24 = vld [vmem:[%s1186_s9] sm:$0xff]  ;;  %v225_v31 = vld [vmem:[%s1186_s9 + $0x8] sm:$0xff] }
  0x1c   : > { %888 = vmatpush3.bf16.msra.mxu1 %v966_v18  ;;  %850 = vmatpush3.bf16.msra.mxu0 %v966_v18  ;;  %v228_v32 = vld [vmem:[%s1186_s9 + $0x20] sm:$0xff]  ;;  %s205_s9 = sand.u32 1, %s1029_s16  }
  0x1d   : > { %321 = vperm.xlu1 %942, %v272_v3   ;;  %949 = vset.pattern.permute.xlu0 %v1040_v4  ;;  %s893_s10 = smul.u32 48, %s205_s9  ;;  %s1354_s19 = scalar_lea.sflag [#allocation3], %s205_s9 }
  0x1e   : > { %360 = vperm.xlu0 %949, %v271_v1   ;;  %881 = vmatprep.subr.bf16.mxu1 %v967_v19 }
  0x1f   : > { %851 = vmatprep.subr.bf16.mxu0 %v967_v19  ;;  %s1335_s13 = scalar_lea.vmem [#allocation2], %s893_s10 }
  0x20   : > { %889 = vmatpush3.bf16.msra.mxu1 %v968_v20  ;;  %852 = vmatpush3.bf16.msra.mxu0 %v968_v20  ;;  %s700_s28 = sshll.u32 %s1335_s13, 4  ;;  %s1348_s28 = int_to_ptr.vmem [resolvable:$true] %s700_s28 }
  0x21   : > { %943 = vset.pattern.permute.xlu1 %v1040_v4  ;;  %882 = vmatprep.subr.bf16.mxu1 %v969_v22  ;;  %s975_s23 = scalar_lea.vmem %s1348_s28, 768  ;;  %p982_p0 = scmp.lt.s32.totalorder %s1348_s28, %s980_s30 }
  0x22   : > { %363 = vperm.xlu1 %943, %v272_v3   ;;  %354 = vperm.xlu0 %949, %v1135_v5   ;;  %p976_p11 = scmp.ne.s32.totalorder %s1348_s28, %s975_s23  ;;  %p983_p1 = scmp.lt.s32.totalorder %s981_s5, %s975_s23 }
  0x23   : > { %853 = vmatprep.subr.bf16.mxu0 %v969_v22 }
  0x24   : > { %890 = vmatpush3.bf16.msra.mxu1 %v970_v23  ;;  %854 = vmatpush3.bf16.msra.mxu0 %v970_v23  ;;  %p977_p12 = pnand %p976_p11, %p1112_p5  ;;  %p984_p2 = por %p983_p1, %p982_p0 }
  0x25   : > { %883 = vmatprep.subr.bf16.mxu1 %v971_v25  ;;  %855 = vmatprep.subr.bf16.mxu0 %v971_v25 }
  0x26   : > { %944 = vset.pattern.permute.xlu1 %v1041_v7  ;;  %369 = vperm.xlu0 %949, %v1139_v6   ;;  %p978_p13 = pneg %p977_p12 }
  0x27   : > { %402 = vperm.xlu1 %944, %v271_v1  }
  0x28   : > { %891 = vmatpush3.bf16.msra.mxu1 %v972_v26  ;;  %856 = vmatpush3.bf16.msra.mxu0 %v972_v26  ;;  %p985_p3 = pnand %p984_p2, %p978_p13 }
  0x29   : > { %884 = vmatprep.subr.bf16.mxu1 %v973_v28  ;;  %857 = vmatprep.subr.bf16.mxu0 %v973_v28 }
  0x2a   : > { %951 = vset.pattern.permute.xlu0 %v1041_v7 }
  0x2b   : > { %945 = vset.pattern.permute.xlu1 %v1042_v8  ;;  %405 = vperm.xlu0 %951, %v272_v3  }
  0x2c   : > { %444 = vperm.xlu1 %945, %v271_v1   ;;  %892 = vmatpush3.bf16.msra.mxu1 %v974_v30 }
  0x2d   : > { %858 = vmatpush3.bf16.msra.mxu0 %v974_v30 }
  0x2f   : > { %408 = vperm.xlu0 %951, %v1145_v9  }
  0x30   : > { %447 = vperm.xlu1 %945, %v272_v3  }
  0x33   : > { %955 = vset.pattern.permute.xlu0 %v1042_v8 }
  0x34   : > { %946 = vset.pattern.permute.xlu1 %v1043_v10  ;;  %441 = vperm.xlu0 %955, %v1131_v2  }
  0x35   : > { %279 = vperm.xlu1 %946, %v1131_v2  }
  0x38   : > { %956 = vset.pattern.permute.xlu0 %v1043_v10 }
  0x39   : > { %288 = vperm.xlu1 %946, %v1145_v9   ;;  %282 = vperm.xlu0 %956, %v271_v1  }
  0x3d   : > { %947 = vset.pattern.permute.xlu1 %v1039_v0  ;;  %285 = vperm.xlu0 %956, %v272_v3  }
  0x3e   : > { %312 = vperm.xlu1 %947, %v1135_v5  }
  0x41   : > { %276 = vperm.xlu0 %956, %v1135_v5  }
  0x42   : > { %324 = vperm.xlu1 %947, %v1145_v9  }
  0x45   : > { %291 = vperm.xlu0 %956, %v1139_v6  }
  0x46   : > { %327 = vperm.xlu1 %947, %v1139_v6  }
  0x49   : > { %240 = vperm.xlu0 %956, %v227_v21  }
  0x4a   : > { %950 = vset.pattern.permute.xlu1 %v1040_v4 }
  0x4b   : > { %357 = vperm.xlu1 %950, %v1131_v2  }
  0x4d   : > { %231 = vperm.xlu0 %956, %v224_v24  }
  0x4f   : > { %366 = vperm.xlu1 %950, %v1145_v9  }
  0x51   : > { %246 = vperm.xlu0 %956, %v229_v27  }
  0x53   : > { %952 = vset.pattern.permute.xlu1 %v1043_v10 }
  0x54   : > { %237 = vperm.xlu1 %952, %v226_v29  }
  0x55   : > { %958 = vset.pattern.permute.xlu0 %v1042_v8 }
  0x58   : > { %953 = vset.pattern.permute.xlu1 %v1041_v7 }
  0x59   : > { %396 = vperm.xlu1 %953, %v1135_v5  }
  0x5d   : > { %399 = vperm.xlu1 %953, %v1131_v2  }
  0x61   : > { %411 = vperm.xlu1 %953, %v1139_v6  }
  0x65   : > { %954 = vset.pattern.permute.xlu1 %v1042_v8 }
  0x66   : > { %438 = vperm.xlu1 %954, %v1135_v5  }
  0x6a   : > { %450 = vperm.xlu1 %954, %v1145_v9  }
  0x6e   : > { %453 = vperm.xlu1 %954, %v1139_v6  }
  0x72   : > { %957 = vset.pattern.permute.xlu1 %v1043_v10 }
  0x73   : > { %234 = vperm.xlu1 %957, %v225_v31  }
  0x77   : > { %243 = vperm.xlu1 %957, %v228_v32  }
  0x98   : > { %v319_v33 = vpop.permute.xlu1 %318  ;;  %v1234_v34 = vpop.permute.xlu0 %315 }
  0x99   : > { %vm331_vm0 = vcmp.eq.s32.totalorder %v319_v33, %v1242_v46  ;;  %vm330_vm13 = vcmp.eq.s32.totalorder %v1234_v34, %v1242_v46 }
  0x9a   : > { %v794_v52 = vsel %vm331_vm0, 1.0, %v1044_v51  ;;  %v793_v20 = vsel %vm330_vm13, 1.0, %v1044_v51 }
  0x9c   : > { %v322_v35 = vpop.permute.xlu1 %321 }
  0x9d   : > { %v361_v36 = vpop.permute.xlu0 %360  ;;  %vm332_vm3 = vcmp.eq.s32.totalorder %v322_v35, %v1242_v46 }
  0x9e   : > { %vm373_vm1 = vcmp.eq.s32.totalorder %v361_v36, %v1242_v46  ;;  %v795_v59 = vsel %vm332_vm3, 1.0, %v1044_v51 }
  0x9f   : > { %v800_v53 = vsel %vm373_vm1, 1.0, %v1044_v51 }
  0xa1   : > { %v364_v37 = vpop.permute.xlu1 %363  ;;  %v1236_v38 = vpop.permute.xlu0 %354 }
  0xa2   : > { %vm374_vm4 = vcmp.eq.s32.totalorder %v364_v37, %v1242_v46 }
  0xa3   : > { %v801_v62 = vsel %vm374_vm4, 1.0, %v1044_v51 }
  0xa5   : > { %v1238_v39 = vpop.permute.xlu0 %369 }
  0xa6   : > { %v403_v40 = vpop.permute.xlu1 %402 }
  0xa7   : > { %vm415_vm5 = vcmp.eq.s32.totalorder %v403_v40, %v1242_v46 }
  0xa8   : > { %v806_v63 = vsel %vm415_vm5, 1.0, %v1044_v51 }
  0xaa   : > { %v406_v41 = vpop.permute.xlu0 %405 }
  0xab   : > { %v445_v42 = vpop.permute.xlu1 %444  ;;  %vm416_vm6 = vcmp.eq.s32.totalorder %v406_v41, %v1242_v46 }
  0xac   : > { %v807_v0 = vsel %vm416_vm6, 1.0, %v1044_v51  ;;  %vm457_vm8 = vcmp.eq.s32.totalorder %v445_v42, %v1242_v46 }
  0xad   : > { %v812_v5 = vsel %vm457_vm8, 1.0, %v1044_v51 }
  0xae   : > { %v1240_v43 = vpop.permute.xlu0 %408 }
  0xaf   : > { %v448_v45 = vpop.permute.xlu1 %447 }
  0xb0   : > { %vm458_vm9 = vcmp.eq.s32.totalorder %v448_v45, %v1242_v46 }
  0xb1   : > { %v813_v6 = vsel %vm458_vm9, 1.0, %v1044_v51 }
  0xb3   : > { %v1244_v47 = vpop.permute.xlu0 %441 }
  0xb4   : > { %v280_v48 = vpop.permute.xlu1 %279  ;;  %vm456_vm8 = vcmp.eq.s32.totalorder %v1244_v47, %v1242_v46 }
  0xb5   : > { %vm294_vm14 = vcmp.eq.s32.totalorder %v280_v48, %v1242_v46  ;;  %v811_v41 = vsel %vm456_vm8, 1.0, %v1044_v51 }
  0xb6   : > { %v787_v21 = vsel %vm294_vm14, 1.0, %v1044_v51 }
  0xb7   : > { %v348_v25 = vadd.f32 %v793_v20, %v787_v21 }
  0xb8   : > { %v1248_v49 = vpop.permute.xlu1 %288  ;;  %v283_v50 = vpop.permute.xlu0 %282 }
  0xb9   : > { %vm295_vm2 = vcmp.eq.s32.totalorder %v283_v50, %v1242_v46  ;;  %vm297_vm9 = vcmp.eq.s32.totalorder %v1248_v49, %v1242_v46 }
  0xba   : > { %v788_v54 = vsel %vm295_vm2, 1.0, %v1044_v51  ;;  %vm371_vm2 = vcmp.eq.s32.totalorder %v1236_v38, %v1242_v46  ;;  %v790_v38 = vsel %vm297_vm9, 1.0, %v1044_v51 }
  0xbb   : > { %v349_v55 = vadd.f32 %v794_v52, %v788_v54  ;;  %v798_v28 = vsel %vm371_vm2, 1.0, %v1044_v51 }
  0xbc   : > { %v286_v56 = vpop.permute.xlu0 %285 }
  0xbd   : > { %v391_v57 = vadd.f32 %v800_v53, %v349_v55  ;;  %vm296_vm7 = vcmp.eq.s32.totalorder %v286_v56, %v1242_v46  ;;  %v313_v58 = vpop.permute.xlu1 %312 }
  0xbe   : > { %v789_v60 = vsel %vm296_vm7, 1.0, %v1044_v51  ;;  %vm329_vm0 = vcmp.eq.s32.totalorder %v313_v58, %v1242_v46 }
  0xbf   : > { %v350_v61 = vadd.f32 %v795_v59, %v789_v60  ;;  %v433_v3 = vadd.f32 %v806_v63, %v391_v57  ;;  %v792_v23 = vsel %vm329_vm0, 1.0, %v1044_v51 }
  0xc0   : > { %v277_v7 = vpop.permute.xlu0 %276 }
  0xc1   : > { %v392_v1 = vadd.f32 %v801_v62, %v350_v61  ;;  %v325_v2 = vpop.permute.xlu1 %324  ;;  %v475_v9 = vadd.f32 %v812_v5, %v433_v3  ;;  %vm293_vm15 = vcmp.eq.s32.totalorder %v277_v7, %v1242_v46 }
  0xc2   : > { %v786_v22 = vsel %vm293_vm15, 1.0, %v1044_v51  ;;  %vm333_vm5 = vcmp.eq.s32.totalorder %v325_v2, %v1242_v46 }
  0xc3   : > { %v434_v4 = vadd.f32 %v807_v0, %v392_v1  ;;  %v347_v26 = vadd.f32 %v792_v23, %v786_v22  ;;  %v796_v32 = vsel %vm333_vm5, 1.0, %v1044_v51 }
  0xc4   : > { %v292_v13 = vpop.permute.xlu0 %291  ;;  %v351_v42 = vadd.f32 %v796_v32, %v790_v38 }
  0xc5   : > { %v328_v8 = vpop.permute.xlu1 %327  ;;  %v476_v10 = vadd.f32 %v813_v6, %v434_v4  ;;  %vm298_vm6 = vcmp.eq.s32.totalorder %v292_v13, %v1242_v46  ;;  %v389_v33 = vadd.f32 %v798_v28, %v347_v26  ;;  %v816_v4 = vld [vmem:[%s1398_s3] ss:$0 sm:$0xff] }
  0xc6   : > { %vm334_vm7 = vcmp.eq.s32.totalorder %v328_v8, %v1242_v46  ;;  %v791_v35 = vsel %vm298_vm6, 1.0, %v1044_v51 }
  0xc7   : > { %v480_v11 = vpack.c.bf16 %v476_v10, %v475_v9  ;;  %v797_v36 = vsel %vm334_vm7, 1.0, %v1044_v51 }
  0xc8   : > { %v241_v15 = vpop.permute.xlu0 %240  ;;  %v352_v47 = vadd.f32 %v797_v36, %v791_v35 }
  0xc9   : > { %657 = vmatprep.mubr.bf16.mxu1 %v480_v11  ;;  %vm251_vm10 = vcmp.eq.s32.totalorder %v241_v15, %v1242_v46 }
  0xca   : > { %v358_v12 = vpop.permute.xlu1 %357 }
  0xcb   : > { %vm372_vm1 = vcmp.eq.s32.totalorder %v358_v12, %v1242_v46 }
  0xcc   : > { %v799_v24 = vsel %vm372_vm1, 1.0, %v1044_v51  ;;  %v232_v60 = vpop.permute.xlu0 %231 }
  0xcd   : > { %v390_v30 = vadd.f32 %v799_v24, %v348_v25  ;;  %vm248_vm1 = vcmp.eq.s32.totalorder %v232_v60, %v1242_v46 }
  0xce   : > { %v367_v14 = vpop.permute.xlu1 %366 }
  0xd0   : > { %v247_v2 = vpop.permute.xlu0 %246 }
  0xd3   : > { %v238_v16 = vpop.permute.xlu1 %237 }
  0xd4   : > { %vm250_vm11 = vcmp.eq.s32.totalorder %v238_v16, %v1242_v46 }
  0xd5   : > { %vm835_vm12 = vmpackc.low %vm251_vm10, %vm250_vm11  ;;  %vm375_vm10 = vcmp.eq.s32.totalorder %v367_v14, %v1242_v46  ;;  %vm376_vm11 = vcmp.eq.s32.totalorder %v1238_v39, %v1242_v46 }
  0xd6   : > { %836 = vmatmul.mubr.msk.bf16.vlgmr.msra.gmra.mrb[0].mxu1 %vm835_vm12, %v1045_v17  ;;  %vm417_vm12 = vcmp.eq.s32.totalorder %v1240_v43, %v1242_v46  ;;  %v802_v44 = vsel %vm375_vm10, 1.0, %v1044_v51  ;;  %v803_v54 = vsel %vm376_vm11, 1.0, %v1044_v51 }
  0xd7   : > { %v393_v52 = vadd.f32 %v802_v44, %v351_v42  ;;  %v808_v55 = vsel %vm417_vm12, 1.0, %v1044_v51  ;;  %v394_v57 = vadd.f32 %v803_v54, %v352_v47 }
  0xd8   : > { %v397_v18 = vpop.permute.xlu1 %396 }
  0xd9   : > { %vm413_vm4 = vcmp.eq.s32.totalorder %v397_v18, %v1242_v46  ;;  %v435_v62 = vadd.f32 %v808_v55, %v393_v52 }
  0xda   : > { %v804_v31 = vsel %vm413_vm4, 1.0, %v1044_v51  ;;  %vm253_vm4 = vcmp.eq.s32.totalorder %v247_v2, %v1242_v46 }
  0xdb   : > { %v431_v40 = vadd.f32 %v804_v31, %v389_v33 }
  0xdc   : > { %v400_v19 = vpop.permute.xlu1 %399 }
  0xdd   : > { %vm414_vm3 = vcmp.eq.s32.totalorder %v400_v19, %v1242_v46 }
  0xde   : > { %v805_v29 = vsel %vm414_vm3, 1.0, %v1044_v51 }
  0xdf   : > { %v432_v34 = vadd.f32 %v805_v29, %v390_v30 }
  0xe0   : > { %v412_v27 = vpop.permute.xlu1 %411 }
  0xe1   : > { %vm418_vm14 = vcmp.eq.s32.totalorder %v412_v27, %v1242_v46  ;;  %v474_v49 = vadd.f32 %v811_v41, %v432_v34 }
  0xe2   : > { %v809_v56 = vsel %vm418_vm14, 1.0, %v1044_v51 }
  0xe3   : > { %v436_v61 = vadd.f32 %v809_v56, %v394_v57 }
  0xe5   : > { %v439_v37 = vpop.permute.xlu1 %438 }
  0xe6   : > { %vm455_vm13 = vcmp.eq.s32.totalorder %v439_v37, %v1242_v46 }
  0xe7   : > { %v810_v45 = vsel %vm455_vm13, 1.0, %v1044_v51 }
  0xe8   : > { %v473_v48 = vadd.f32 %v810_v45, %v431_v40 }
  0xe9   : > { %v451_v50 = vpop.permute.xlu1 %450 }
  0xea   : > { %vm459_vm15 = vcmp.eq.s32.totalorder %v451_v50, %v1242_v46  ;;  %v479_v53 = vpack.c.bf16 %v474_v49, %v473_v48 }
  0xeb   : > { %v814_v58 = vsel %vm459_vm15, 1.0, %v1044_v51 }
  0xec   : > { %649 = vmatprep.mubr.bf16.mxu0 %v479_v53  ;;  %v477_v63 = vadd.f32 %v814_v58, %v435_v62 }
  0xed   : > { %v454_v59 = vpop.permute.xlu1 %453 }
  0xee   : > { %vm460_vm0 = vcmp.eq.s32.totalorder %v454_v59, %v1242_v46 }
  0xef   : > { %v815_v39 = vsel %vm460_vm0, 1.0, %v1044_v51 }
  0xf0   : > { %v478_v0 = vadd.f32 %v815_v39, %v436_v61 }
  0xf2   : > { %v235_v43 = vpop.permute.xlu1 %234  ;;  %v481_v1 = vpack.c.bf16 %v478_v0, %v477_v63 }
  0xf3   : > { %vm249_vm2 = vcmp.eq.s32.totalorder %v235_v43, %v1242_v46 }
  0xf4   : > { %vm833_vm3 = vmpackc.low %vm249_vm2, %vm248_vm1  ;;  %665 = vmatprep.mubr.bf16.mxu1 %v481_v1 }
  0xf5   : > { %834 = vmatmul.mubr.msk.bf16.vlgmr.msra.gmra.mrb[0].mxu0 %vm833_vm3, %v1045_v17 }
  0xf6   : > { %v244_v3 = vpop.permute.xlu1 %243 }
  0xf7   : > { %vm252_vm5 = vcmp.eq.s32.totalorder %v244_v3, %v1242_v46 }
  0xf8   : > { %vm837_vm6 = vmpackc.low %vm253_vm4, %vm252_vm5 }
  0xf9   : > { %838 = vmatmul.mubr.msk.bf16.gmra.mrb[4].mxu1 %vm837_vm6, %v1045_v17 }
 0x1a9   : > { %v865_v51 = vpop.f32.mrb[0].mxu1 }
 0x1aa   : > { %v866_v5 = vpop.f32.mrb[1].mxu1 }
 0x1ab   : > { %v867_v6 = vadd.f32 %v866_v5, %v865_v51  ;;  %v868_v7 = vpop.f32.mrb[2].mxu1 }
 0x1ac   : > { %v869_v8 = vpop.f32.mrb[3].mxu1 }
 0x1ad   : > { %v660_v9 = vadd.f32 %v867_v6, %v816_v4  ;;  %v870_v10 = vadd.f32 %v869_v8, %v868_v7 }
 0x1af   : > { %v676_v11 = vmax.f32 %v660_v9, 0.0  ;;  %v663_v12 = vadd.f32 %v870_v10, %v816_v4 }
 0x1b1   : > { %682 = vst [vmem:[%s1335_s13 + $0x10] sm:$0xff] %v676_v11  ;;  %v677_v46 = vmax.f32 %v663_v12, 0.0 }
 0x1b3   : > { %683 = vst [vmem:[%s1335_s13 + $0x18] sm:$0xff] %v677_v46 }
 0x1c8   : > { %v859_v13 = vpop.f32.mrb[0].mxu0 }
 0x1c9   : > { %v860_v14 = vpop.f32.mrb[1].mxu0 }
 0x1ca   : > { %v861_v15 = vadd.f32 %v860_v14, %v859_v13  ;;  %v862_v16 = vpop.f32.mrb[2].mxu0 }
 0x1cb   : > { %v863_v17 = vpop.f32.mrb[3].mxu0 }
 0x1cc   : > { %v652_v18 = vadd.f32 %v861_v15, %v816_v4  ;;  %v864_v19 = vadd.f32 %v863_v17, %v862_v16  ;;  %v871_v20 = vpop.f32.mrb[4].mxu1 }
 0x1cd   : > { %v872_v21 = vpop.f32.mrb[5].mxu1 }
 0x1ce   : > { %v674_v22 = vmax.f32 %v652_v18, 0.0  ;;  %v655_v23 = vadd.f32 %v864_v19, %v816_v4  ;;  %v873_v24 = vadd.f32 %v872_v21, %v871_v20  ;;  %v874_v25 = vpop.f32.mrb[6].mxu1 }
 0x1cf   : > { %v875_v26 = vpop.f32.mrb[7].mxu1 }
 0x1d0   : > { %680 = vst [vmem:[%s1335_s13] sm:$0xff] %v674_v22  ;;  %v675_v27 = vmax.f32 %v655_v23, 0.0  ;;  %v668_v28 = vadd.f32 %v873_v24, %v816_v4  ;;  %v876_v29 = vadd.f32 %v875_v26, %v874_v25 }
 0x1d2   : > { %681 = vst [vmem:[%s1335_s13 + $0x8] sm:$0xff] %v675_v27  ;;  %v678_v30 = vmax.f32 %v668_v28, 0.0  ;;  %v671_v31 = vadd.f32 %v876_v29, %v816_v4 }
 0x1d4   : > { %684 = vst [vmem:[%s1335_s13 + $0x20] sm:$0xff] %v678_v30  ;;  %v679_v32 = vmax.f32 %v671_v31, 0.0 }
 0x1d6   : > { %685 = vst [vmem:[%s1335_s13 + $0x28] sm:$0xff] %v679_v32 }
 0x1d7   : > { %988 = shalt.err (!%p985_p3)
}
 0x1d8   : > { %s989_s6 = scalar_lea.hbm %s1346_s22, 768  ;;  %s993_s9 = scalar_lea.hbm %s1399_s4, 1536 }
 0x1d9   : > { %p990_p4 = scmp.ne.s32.totalorder %s1346_s22, %s989_s6  ;;  %p994_p9 = scmp.lt.u32.totalorder %s1346_s22, %s1399_s4 }
 0x1da   : > { %p995_p10 = scmp.lt.u32.totalorder %s993_s9, %s989_s6  ;;  %p997_p12 = scmp.lt.u32.totalorder %s989_s6, %s1346_s22 }
 0x1db   : > { %p991_p7 = pnand %p990_p4, %p1112_p5 }
 0x1dc   : > { %p996_p11 = por %p995_p10, %p994_p9 }
 0x1dd   : > { %p992_p8 = pneg %p991_p7 }
 0x1de   : > { %p998_p13 = por %p997_p12, %p996_p11 }
 0x1e0   : > { %p999_p0 = pnand %p998_p13, %p992_p8 }
 0x1e2   : > { %1002 = shalt.err (!%p999_p0)
}
 0x1e3   : > { %s1047_s12 = smov 128   ;;  %s1048_s13 = smov 8  }
 0x1e4   : > { %894 = dma.vmem_to_hbm [thread:$0]  (%p1112_p5), %s1348_s28, 768, %s1346_s22, %s1354_s19, %s1047_s12, %s1047_s12, %s1048_s13  }
 0x1e5 PF: > { %p900_p1 = scmp.ge.s32.totalorder %s1037_s18, 2  ;;  %s715_s27 = sand.u32 1, %s1025_s15  }
 0x1e6   : > { %s716_s14 = scalar_lea.sflag [#allocation3], %s715_s27 }
 0x1e7   : > { %p897_p2 = pnand %p900_p1, %p1116_p6 }
 0x1e9   : > { %1020 = dma.done.wait (!%p897_p2), %s716_s14, 768  }
 0x1ea   : > { %1022 = vsyncadd (!%p897_p2), %s716_s14, 4294966528  ;;  %p14_p3 = scmp.ge.s32.totalorder %s1099_s21, 4   ;;  %s1402_s15 = smov %s1029_s16 }
 0x1eb   : > { %s1403_s16 = smov %s1033_s17  ;;  %s1404_s17 = smov %s1110_s24 }
 0x1ec   : > { %s1405_s18 = smov %s1099_s21  ;;  %16 = sbr.rel (!%p14_p3) target bundleno = 3 (0x3), region = 74 }
 0x1f3   :  { %721 = vsyncpa [#allocation3], 1 }
 0x1f4   :  { %723 = vsyncpa [#allocation3 + $0x1], 1 }

</bundles_post_ra>
